<compile_context>
chip_gen: v7x
topology: tpu7x:2x2x1
jax: 0.10.0
libtpu: 0.0.40
codegen_flags: <defaults>
</compile_context>

<pallas_src>
import jax
import jax.numpy as jnp
from jax.experimental import pallas as pl
from jax.experimental.pallas import tpu as pltpu

HIDDEN = 100          # logical hidden width (as in the PyTorch module)
LANE = 128            # TPU lane width — hidden feature dims are padded to this


def _round_up(n, m):
    return ((n + m - 1) // m) * m


# ---------------------------------------------------------------------------
# Kernel: full MLP on one batch tile. Weights/biases are VMEM-resident
# (constant index_map); x/out tiles stream over the batch grid axis.
# ---------------------------------------------------------------------------
def dqn_kernel(x_ref, w1_ref, b1_ref, w2_ref, b2_ref, w3_ref, b3_ref,
               wh_ref, bh_ref, o_ref):
    # x arrives as a narrow f32 tile (tb, input_size); cast to bf16 in VMEM so the
    # HBM side never sees a widened / recast copy. MXU accumulates in f32 throughout.
    x = x_ref[...].astype(jnp.bfloat16)
    h = jnp.dot(x, w1_ref[...], preferred_element_type=jnp.float32) + b1_ref[...]
    h = jnp.maximum(h, 0.0).astype(jnp.bfloat16)
    h = jnp.dot(h, w2_ref[...], preferred_element_type=jnp.float32) + b2_ref[...]
    h = jnp.maximum(h, 0.0).astype(jnp.bfloat16)
    h = jnp.dot(h, w3_ref[...], preferred_element_type=jnp.float32) + b3_ref[...]
    h = jnp.maximum(h, 0.0).astype(jnp.bfloat16)
    out = jnp.dot(h, wh_ref[...], preferred_element_type=jnp.float32) + bh_ref[...]
    o_ref[...] = out.astype(o_ref.dtype)


# ---------------------------------------------------------------------------
# Param handling: logical f32 params -> hidden-dim-padded bf16 weights / f32 biases.
# Only the 100-wide hidden dims are padded (to 128); input/output dims stay logical.
# Padded rows/cols are exact zeros so padded lanes contribute exactly zero.
# ---------------------------------------------------------------------------
def pad_and_cast_params(params):
    (w1, b1, w2, b2, w3, b3, wh, bh) = params
    hid_p = _round_up(HIDDEN, LANE)
    dh = hid_p - HIDDEN

    def pad_w(w, pad_rows, pad_cols):
        return jnp.pad(w, ((0, pad_rows), (0, pad_cols))).astype(jnp.bfloat16)

    def pad_b(b, pad_cols):
        return jnp.pad(b, ((0, 0), (0, pad_cols))).astype(jnp.float32)

    return (pad_w(w1, 0, dh), pad_b(b1, dh),
            pad_w(w2, dh, dh), pad_b(b2, dh),
            pad_w(w3, dh, dh), pad_b(b3, dh),
            pad_w(wh, dh, 0), pad_b(bh, 0))


def dqn_forward(x, params, *, tile_b=1024):
    """x: (batch, input_size) f32; params: logical (unpadded) f32 params."""
    batch, in_size = x.shape
    out_size = params[6].shape[1]          # logical head output width

    pw1, pb1, pw2, pb2, pw3, pb3, pwh, pbh = pad_and_cast_params(params)
    hid_p = pw1.shape[1]

    # Batch tiling:
    #  * large batches stream tile_b-row tiles (1024 amortizes the ~0.35 us/step overhead)
    #  * mid batches (>= 64) split into >= 2 tiles so v7x's 2nd TensorCore gets work
    #  * tiny action-selection batches use one tile rounded to 16 rows (bf16 sublane pack)
    if batch >= 2 * tile_b:
        tb = tile_b
    elif batch >= 64:
        tb = _round_up(-(-batch // 2), 16)
    else:
        tb = _round_up(max(batch, 1), 16)
    padded_batch = _round_up(batch, tb)
    grid = (padded_batch // tb,)

    # Only batch-pad when necessary; never lane-pad or recast x on the HBM side.
    x_in = x if padded_batch == batch else jnp.pad(x, ((0, padded_batch - batch), (0, 0)))

    def resident(shape):
        return pl.BlockSpec(shape, lambda i: (0, 0))

    x_spec = pl.BlockSpec((tb, in_size), lambda i: (i, 0))        # narrow f32 input tile
    out_spec = pl.BlockSpec((tb, out_size), lambda i: (i, 0))     # narrow f32 output tile

    flops = 2 * padded_batch * (in_size * hid_p + 2 * hid_p * hid_p + hid_p * out_size)
    param_bytes = sum(int(p.size) * p.dtype.itemsize
                      for p in (pw1, pb1, pw2, pb2, pw3, pb3, pwh, pbh))
    bytes_accessed = (int(x_in.size) * x_in.dtype.itemsize
                      + padded_batch * out_size * 4
                      + param_bytes)
    cost = pl.CostEstimate(flops=flops, transcendentals=0,
                           bytes_accessed=bytes_accessed)

    out = pl.pallas_call(
        dqn_kernel,
        out_shape=jax.ShapeDtypeStruct((padded_batch, out_size), jnp.float32),
        grid_spec=pltpu.PrefetchScalarGridSpec(
            num_scalar_prefetch=0,
            grid=grid,
            in_specs=[
                x_spec,
                resident((in_size, hid_p)), resident((1, hid_p)),
                resident((hid_p, hid_p)), resident((1, hid_p)),
                resident((hid_p, hid_p)), resident((1, hid_p)),
                resident((hid_p, out_size)), resident((1, out_size)),
            ],
            out_specs=out_spec,
        ),
        compiler_params=pltpu.CompilerParams(
            dimension_semantics=("parallel",)),   # shards batch tiles across v7x's 2 TCs
        cost_estimate=cost,
    )(x_in, pw1, pb1, pw2, pb2, pw3, pb3, pwh, pbh)

    return out[:batch]


# ---------------------------------------------------------------------------
# Init + references
# ---------------------------------------------------------------------------
def init_params(key, input_size, output_size):
    """Deterministic init mimicking PyTorch nn.Linear default (uniform +-1/sqrt(fan_in)).
    Weights stored as (in_features, out_features), biases as (1, out_features)."""
    def linear(k, fan_in, fan_out):
        kw, kb = jax.random.split(k)
        bound = 1.0 / jnp.sqrt(fan_in)
        w = jax.random.uniform(kw, (fan_in, fan_out), jnp.float32, -bound, bound)
        b = jax.random.uniform(kb, (1, fan_out), jnp.float32, -bound, bound)
        return w, b

    k1, k2, k3, k4 = jax.random.split(key, 4)
    w1, b1 = linear(k1, input_size, HIDDEN)
    w2, b2 = linear(k2, HIDDEN, HIDDEN)
    w3, b3 = linear(k3, HIDDEN, HIDDEN)
    wh, bh = linear(k4, HIDDEN, output_size)
    return (w1, b1, w2, b2, w3, b3, wh, bh)


def dqn_reference_f32(x, params):
    (w1, b1, w2, b2, w3, b3, wh, bh) = params
    h = jnp.maximum(x @ w1 + b1, 0.0)
    h = jnp.maximum(h @ w2 + b2, 0.0)
    h = jnp.maximum(h @ w3 + b3, 0.0)
    return h @ wh + bh


def dqn_reference_bf16emu(x, params):
    """Reference matching the kernel's numerics (bf16 operands, f32 accumulate)."""
    (w1, b1, w2, b2, w3, b3, wh, bh) = params

    def layer(h, w, b, relu=True):
        y = jnp.dot(h, w.astype(jnp.bfloat16),
                    preferred_element_type=jnp.float32) + b
        if relu:
            y = jnp.maximum(y, 0.0).astype(jnp.bfloat16)
        return y

    h = layer(x.astype(jnp.bfloat16), w1, b1)
    h = layer(h, w2, b2)
    h = layer(h, w3, b3)
    return layer(h, wh, bh, relu=False)


if __name__ == "__main__":
    input_size = 16
    output_size = 8

    key = jax.random.PRNGKey(0)
    k_params, k_x1, k_x2, k_x3 = jax.random.split(key, 4)
    params = init_params(k_params, input_size, output_size)

    # Small batch (action selection): single 16-row tile, grid of 1.
    x_small = jax.random.normal(k_x1, (2, input_size), jnp.float32)
    out_small = jax.block_until_ready(dqn_forward(x_small, params))
    assert out_small.shape == (2, output_size), out_small.shape
    assert jnp.allclose(out_small, dqn_reference_bf16emu(x_small, params),
                        atol=1e-3, rtol=1e-3)
    assert jnp.allclose(out_small, dqn_reference_f32(x_small, params),
                        atol=5e-2, rtol=5e-2)

    # Training-size batch (non-multiple of tile): split into 2 grid steps (v7x sharding),
    # exercises batch padding.
    x_big = jax.random.normal(k_x2, (300, input_size), jnp.float32)
    out_big = jax.block_until_ready(dqn_forward(x_big, params))
    assert out_big.shape == (300, output_size), out_big.shape
    assert jnp.allclose(out_big, dqn_reference_bf16emu(x_big, params),
                        atol=1e-3, rtol=1e-3)
    assert jnp.allclose(out_big, dqn_reference_f32(x_big, params),
                        atol=5e-2, rtol=5e-2)

    # Large replay batch: streams 1024-row tiles with batch padding on the last tile.
    x_huge = jax.random.normal(k_x3, (2500, input_size), jnp.float32)
    out_huge = jax.block_until_ready(dqn_forward(x_huge, params))
    assert out_huge.shape == (2500, output_size), out_huge.shape
    assert jnp.allclose(out_huge, dqn_reference_bf16emu(x_huge, params),
                        atol=1e-3, rtol=1e-3)
    assert jnp.allclose(out_huge, dqn_reference_f32(x_huge, params),
                        atol=5e-2, rtol=5e-2)

    print("KERNEL_OK")
</pallas_src>

<mosaic_0001>
module attributes {stable_mosaic.version = 11 : i64} {
  func.func @dqn_kernel(%arg0: i32, %arg1: memref<16x16xf32, #tpu.memory_space<vmem>>, %arg2: memref<16x128xbf16, #tpu.memory_space<vmem>>, %arg3: memref<1x128xf32, #tpu.memory_space<vmem>>, %arg4: memref<128x128xbf16, #tpu.memory_space<vmem>>, %arg5: memref<1x128xf32, #tpu.memory_space<vmem>>, %arg6: memref<128x128xbf16, #tpu.memory_space<vmem>>, %arg7: memref<1x128xf32, #tpu.memory_space<vmem>>, %arg8: memref<128x8xbf16, #tpu.memory_space<vmem>>, %arg9: memref<1x8xf32, #tpu.memory_space<vmem>>, %arg10: memref<16x8xf32, #tpu.memory_space<vmem>>) attributes {dimension_semantics = [#tpu.dimension_semantics<parallel>], iteration_bounds = array<i64: 1>, scalar_prefetch = 0 : i64, scratch_operands = 0 : i64, tpu.core_type = #tpu.core_type<tc>, window_params = [{transform_indices = @transform_0, window_bounds = array<i64: 16, 16>}, {pipeline_mode = #tpu.pipeline_mode<synchronous>, transform_indices = @transform_1, window_bounds = array<i64: 16, 128>}, {pipeline_mode = #tpu.pipeline_mode<synchronous>, transform_indices = @transform_2, window_bounds = array<i64: 1, 128>}, {pipeline_mode = #tpu.pipeline_mode<synchronous>, transform_indices = @transform_3, window_bounds = array<i64: 128, 128>}, {pipeline_mode = #tpu.pipeline_mode<synchronous>, transform_indices = @transform_4, window_bounds = array<i64: 1, 128>}, {pipeline_mode = #tpu.pipeline_mode<synchronous>, transform_indices = @transform_5, window_bounds = array<i64: 128, 128>}, {pipeline_mode = #tpu.pipeline_mode<synchronous>, transform_indices = @transform_6, window_bounds = array<i64: 1, 128>}, {pipeline_mode = #tpu.pipeline_mode<synchronous>, transform_indices = @transform_7, window_bounds = array<i64: 128, 8>}, {pipeline_mode = #tpu.pipeline_mode<synchronous>, transform_indices = @transform_8, window_bounds = array<i64: 1, 8>}, {transform_indices = @transform_9, window_bounds = array<i64: 16, 8>}]} {
    %c0 = arith.constant 0 : index
    %c0_0 = arith.constant 0 : index
    %0 = vector.load %arg1[%c0, %c0_0] : memref<16x16xf32, #tpu.memory_space<vmem>>, vector<16x16xf32>
    %1 = arith.truncf %0 : vector<16x16xf32> to vector<16x16xbf16>
    %c0_1 = arith.constant 0 : index
    %c0_2 = arith.constant 0 : index
    %2 = vector.load %arg2[%c0_1, %c0_2] : memref<16x128xbf16, #tpu.memory_space<vmem>>, vector<16x128xbf16>
    %cst = arith.constant dense<0.000000e+00> : vector<16x128xf32>
    %3 = tpu.matmul %1, %2, %cst {dimension_numbers = #tpu.dot_dimension_numbers<[1], [0], [0], [1], [0, 0, 1, 1], [], []>} : vector<16x16xbf16>, vector<16x128xbf16>, vector<16x128xf32> -> vector<16x128xf32>
    %c0_3 = arith.constant 0 : index
    %c0_4 = arith.constant 0 : index
    %4 = vector.load %arg3[%c0_3, %c0_4] : memref<1x128xf32, #tpu.memory_space<vmem>>, vector<1x128xf32>
    %5 = vector.broadcast %4 : vector<1x128xf32> to vector<16x128xf32>
    %6 = arith.addf %3, %5 : vector<16x128xf32>
    %cst_5 = arith.constant 0.000000e+00 : f32
    %7 = vector.broadcast %cst_5 : f32 to vector<16x128xf32>
    %8 = arith.maximumf %6, %7 : vector<16x128xf32>
    %9 = arith.truncf %8 : vector<16x128xf32> to vector<16x128xbf16>
    %c0_6 = arith.constant 0 : index
    %c0_7 = arith.constant 0 : index
    %10 = vector.load %arg4[%c0_6, %c0_7] : memref<128x128xbf16, #tpu.memory_space<vmem>>, vector<128x128xbf16>
    %cst_8 = arith.constant dense<0.000000e+00> : vector<16x128xf32>
    %11 = tpu.matmul %9, %10, %cst_8 {dimension_numbers = #tpu.dot_dimension_numbers<[1], [0], [0], [1], [0, 0, 1, 1], [], []>} : vector<16x128xbf16>, vector<128x128xbf16>, vector<16x128xf32> -> vector<16x128xf32>
    %c0_9 = arith.constant 0 : index
    %c0_10 = arith.constant 0 : index
    %12 = vector.load %arg5[%c0_9, %c0_10] : memref<1x128xf32, #tpu.memory_space<vmem>>, vector<1x128xf32>
    %13 = vector.broadcast %12 : vector<1x128xf32> to vector<16x128xf32>
    %14 = arith.addf %11, %13 : vector<16x128xf32>
    %cst_11 = arith.constant 0.000000e+00 : f32
    %15 = vector.broadcast %cst_11 : f32 to vector<16x128xf32>
    %16 = arith.maximumf %14, %15 : vector<16x128xf32>
    %17 = arith.truncf %16 : vector<16x128xf32> to vector<16x128xbf16>
    %c0_12 = arith.constant 0 : index
    %c0_13 = arith.constant 0 : index
    %18 = vector.load %arg6[%c0_12, %c0_13] : memref<128x128xbf16, #tpu.memory_space<vmem>>, vector<128x128xbf16>
    %cst_14 = arith.constant dense<0.000000e+00> : vector<16x128xf32>
    %19 = tpu.matmul %17, %18, %cst_14 {dimension_numbers = #tpu.dot_dimension_numbers<[1], [0], [0], [1], [0, 0, 1, 1], [], []>} : vector<16x128xbf16>, vector<128x128xbf16>, vector<16x128xf32> -> vector<16x128xf32>
    %c0_15 = arith.constant 0 : index
    %c0_16 = arith.constant 0 : index
    %20 = vector.load %arg7[%c0_15, %c0_16] : memref<1x128xf32, #tpu.memory_space<vmem>>, vector<1x128xf32>
    %21 = vector.broadcast %20 : vector<1x128xf32> to vector<16x128xf32>
    %22 = arith.addf %19, %21 : vector<16x128xf32>
    %cst_17 = arith.constant 0.000000e+00 : f32
    %23 = vector.broadcast %cst_17 : f32 to vector<16x128xf32>
    %24 = arith.maximumf %22, %23 : vector<16x128xf32>
    %25 = arith.truncf %24 : vector<16x128xf32> to vector<16x128xbf16>
    %c0_18 = arith.constant 0 : index
    %c0_19 = arith.constant 0 : index
    %26 = vector.load %arg8[%c0_18, %c0_19] : memref<128x8xbf16, #tpu.memory_space<vmem>>, vector<128x8xbf16>
    %cst_20 = arith.constant dense<0.000000e+00> : vector<16x8xf32>
    %27 = tpu.matmul %25, %26, %cst_20 {dimension_numbers = #tpu.dot_dimension_numbers<[1], [0], [0], [1], [0, 0, 1, 1], [], []>} : vector<16x128xbf16>, vector<128x8xbf16>, vector<16x8xf32> -> vector<16x8xf32>
    %c0_21 = arith.constant 0 : index
    %c0_22 = arith.constant 0 : index
    %28 = vector.load %arg9[%c0_21, %c0_22] : memref<1x8xf32, #tpu.memory_space<vmem>>, vector<1x8xf32>
    %29 = vector.broadcast %28 : vector<1x8xf32> to vector<16x8xf32>
    %30 = arith.addf %27, %29 : vector<16x8xf32>
    %c0_23 = arith.constant 0 : index
    %c0_24 = arith.constant 0 : index
    %31 = vector.load %arg10[%c0_23, %c0_24] : memref<16x8xf32, #tpu.memory_space<vmem>>, vector<16x8xf32>
    tpu.vector_store %arg10[%c0_23, %c0_24], %30 {strides = array<i32>} : memref<16x8xf32, #tpu.memory_space<vmem>>, vector<16x8xf32>,
    return
  }
  func.func @transform_0(%arg0: i32) -> (i32, i32) {
    %c0_i32 = arith.constant 0 : i32
    %c0_i32_0 = arith.constant 0 : i32
    return %arg0, %c0_i32 : i32, i32
  }
  func.func @transform_1(%arg0: i32) -> (i32, i32) {
    %c0_i32 = arith.constant 0 : i32
    %c0_i32_0 = arith.constant 0 : i32
    %c0_i32_1 = arith.constant 0 : i32
    return %c0_i32, %c0_i32_0 : i32, i32
  }
  func.func @transform_2(%arg0: i32) -> (i32, i32) {
    %c0_i32 = arith.constant 0 : i32
    %c0_i32_0 = arith.constant 0 : i32
    %c0_i32_1 = arith.constant 0 : i32
    return %c0_i32, %c0_i32_0 : i32, i32
  }
  func.func @transform_3(%arg0: i32) -> (i32, i32) {
    %c0_i32 = arith.constant 0 : i32
    %c0_i32_0 = arith.constant 0 : i32
    %c0_i32_1 = arith.constant 0 : i32
    return %c0_i32, %c0_i32_0 : i32, i32
  }
  func.func @transform_4(%arg0: i32) -> (i32, i32) {
    %c0_i32 = arith.constant 0 : i32
    %c0_i32_0 = arith.constant 0 : i32
    %c0_i32_1 = arith.constant 0 : i32
    return %c0_i32, %c0_i32_0 : i32, i32
  }
  func.func @transform_5(%arg0: i32) -> (i32, i32) {
    %c0_i32 = arith.constant 0 : i32
    %c0_i32_0 = arith.constant 0 : i32
    %c0_i32_1 = arith.constant 0 : i32
    return %c0_i32, %c0_i32_0 : i32, i32
  }
  func.func @transform_6(%arg0: i32) -> (i32, i32) {
    %c0_i32 = arith.constant 0 : i32
    %c0_i32_0 = arith.constant 0 : i32
    %c0_i32_1 = arith.constant 0 : i32
    return %c0_i32, %c0_i32_0 : i32, i32
  }
  func.func @transform_7(%arg0: i32) -> (i32, i32) {
    %c0_i32 = arith.constant 0 : i32
    %c0_i32_0 = arith.constant 0 : i32
    %c0_i32_1 = arith.constant 0 : i32
    return %c0_i32, %c0_i32_0 : i32, i32
  }
  func.func @transform_8(%arg0: i32) -> (i32, i32) {
    %c0_i32 = arith.constant 0 : i32
    %c0_i32_0 = arith.constant 0 : i32
    %c0_i32_1 = arith.constant 0 : i32
    return %c0_i32, %c0_i32_0 : i32, i32
  }
  func.func @transform_9(%arg0: i32) -> (i32, i32) {
    %c0_i32 = arith.constant 0 : i32
    %c0_i32_0 = arith.constant 0 : i32
    return %arg0, %c0_i32 : i32, i32
  }
}

</mosaic_0001>

<bundles_post_ra>
// kernel: tpu_custom_call.1
= control target key start
LH: loop header
LB: loop body
LE: loop exit
PB: predicated region body
PF: predicated region fallthrough
CT: control target
= control target key end

     0   :  { %14 = vsyncpa [#allocation3], 0  ;;  %s868_s0 = inlined_call_operand.hbm [shape: f32[16,16], index: 0, kind: input, shape index: {}]   ;;  %s869_s1 = inlined_call_operand.vmem [shape: bf16[16,128], index: 1, kind: input, shape index: {}]   ;;  %s870_s2 = inlined_call_operand.vmem [shape: f32[1,128], index: 2, kind: input, shape index: {}]   ;;  %s871_s3 = inlined_call_operand.vmem [shape: bf16[128,128], index: 3, kind: input, shape index: {}]   ;;  %s872_s4 = inlined_call_operand.vmem [shape: f32[1,128], index: 4, kind: input, shape index: {}]   ;;  %s873_s5 = inlined_call_operand.hbm [shape: bf16[128,128], index: 5, kind: input, shape index: {}]   ;;  %s874_s6 = inlined_call_operand.vmem [shape: f32[1,128], index: 6, kind: input, shape index: {}]   ;;  %s875_s7 = inlined_call_operand.vmem [shape: bf16[128,8], index: 7, kind: input, shape index: {}]   ;;  %s876_s8 = inlined_call_operand.vmem [shape: f32[1,8], index: 8, kind: input, shape index: {}]   ;;  %s877_s9 = inlined_call_operand.vmem [shape: f32[16,8], index: 9, kind: output, shape index: {}]  }
   0x1   :  { %15 = vsyncpa [#allocation5], 0  ;;  %s684_s30 = smov [#allocation2]   ;;  %s636_s13 = scalar_lea.hbm %s868_s0, 256 }
   0x2   :  { %s21_s10 = sshll.u32 %s684_s30, 4  ;;  %p637_p0 = scmp.ne.s32.totalorder %s868_s0, %s636_s13  ;;  %s22_s10 = int_to_ptr.vmem [resolvable:$true] %s21_s10 }
   0x3   :  { %p640_p1 = scmp.lt.u32.totalorder %s636_s13, %s868_s0 }
   0x5   :  { %p642_p2 = pnand %p640_p1, %p637_p0 }
   0x7   :  { %645 = shalt.err (!%p642_p2)
}
   0x8   :  { %s646_s18 = scalar_lea.vmem %s22_s10, 256  ;;  %p651_p4 = scmp.lt.s32.totalorder %s22_s10, %s22_s10 }
   0x9   :  { %p647_p3 = scmp.ne.s32.totalorder %s22_s10, %s646_s18  ;;  %p652_p5 = scmp.lt.s32.totalorder %s646_s18, %s646_s18 }
   0xb   :  { %p653_p6 = por %p652_p5, %p651_p4 }
   0xd   :  { %p654_p7 = pnand %p653_p6, %p647_p3 }
   0xf   :  { %657 = shalt.err (!%p654_p7)
}
  0x10   :  { %s685_s19 = smov 128   ;;  %s686_s20 = smov 8  }
  0x11   :  { %27 = dma.hbm_to_vmem [thread:$0]  %s868_s0, 256, %s22_s10, [#allocation3], %s685_s19, %s685_s19, %s686_s20  }
  0x12   :  { %s687_s23 = smov [#allocation4]   ;;  %s658_s27 = scalar_lea.hbm %s873_s5, 1024 }
  0x13   :  { %s41_s24 = sshll.u32 %s687_s23, 4  ;;  %p659_p8 = scmp.ne.s32.totalorder %s873_s5, %s658_s27  ;;  %s42_s24 = int_to_ptr.vmem [resolvable:$true] %s41_s24 }
  0x14   :  { %p662_p9 = scmp.lt.u32.totalorder %s658_s27, %s873_s5 }
  0x16   :  { %p664_p10 = pnand %p662_p9, %p659_p8 }
  0x18   :  { %667 = shalt.err (!%p664_p10)
}
  0x19   :  { %s668_s12 = scalar_lea.vmem %s42_s24, 1024  ;;  %p673_p12 = scmp.lt.s32.totalorder %s42_s24, %s42_s24 }
  0x1a   :  { %p669_p11 = scmp.ne.s32.totalorder %s42_s24, %s668_s12  ;;  %p674_p13 = scmp.lt.s32.totalorder %s668_s12, %s668_s12 }
  0x1c   :  { %p675_p0 = por %p674_p13, %p673_p12 }
  0x1e   :  { %p676_p1 = pnand %p675_p0, %p669_p11 }
  0x20   :  { %679 = shalt.err (!%p676_p1)
}
  0x21   :  { %s688_s0 = smov 64   ;;  %s689_s10 = smov 4  }
  0x22   :  { %47 = dma.hbm_to_vmem [thread:$0]  %s873_s5, 1024, %s42_s24, [#allocation5], %s688_s0, %s688_s0, %s689_s10  }
  0x23   :  { %680 = dma.done.wait [#allocation3], 256  }
  0x24   :  { %681 = vsyncadd [#allocation3], 4294967040 }
  0x25   :  { %682 = dma.done.wait [#allocation5], 1024  }
  0x26   :  { %683 = vsyncadd [#allocation5], 4294966272  ;;  %v690_v0 = vmov 0.0   ;;  %vm691_vm0 = vmmov 0   ;;  %v611_v1 = vld [vmem:[%s869_s1] sm:$0xff]   ;;  %v62_v3 = vld [vmem:[#allocation2 + $0x8] sm:$0xff] }
  0x27   :  { %537 = vmatprep.subr.bf16.mxu0 %v690_v0  ;;  %539 = vmatprep.mubr.msk.bf16.mxu0 %vm691_vm0, %v690_v0  ;;  %v61_v2 = vld [vmem:[#allocation2] sm:$0xff]  ;;  %vm79_vm1 = vcmask 130048   ;;  %v613_v6 = vld [vmem:[%s871_s3 + $0x8] sm:$0xff]   ;;  %v614_v7 = vld [vmem:[%s871_s3 + $0x10] sm:$0xff]   ;;  %vm469_vm2 = vcmask 64512  }
  0x28   :  { %543 = vmatprep.subr.bf16.mxu1 %v690_v0  ;;  %559 = vmatprep.mubr.msk.bf16.mxu1 %vm691_vm0, %v690_v0  ;;  %v63_v4 = vpack.c.bf16 %v62_v3, %v61_v2  ;;  %v612_v5 = vld [vmem:[%s871_s3] sm:$0xff]   ;;  %v615_v8 = vld [vmem:[%s871_s3 + $0x18] sm:$0xff]   ;;  %v617_v10 = vld [vmem:[%s871_s3 + $0x28] sm:$0xff]  }
  0x29   :  { %538 = vmatpush3.bf16.msra.mxu0 %v611_v1  ;;  %544 = vmatpush3.bf16.msra.mxu1 %v612_v5  ;;  %v616_v9 = vld [vmem:[%s871_s3 + $0x20] sm:$0xff]   ;;  %v618_v11 = vld [vmem:[%s871_s3 + $0x30] sm:$0xff]   ;;  %v619_v12 = vld [vmem:[%s871_s3 + $0x38] sm:$0xff]  }
  0x2a   :  { %563 = vmatprep.subr.bf16.mxu0 %v690_v0  ;;  %545 = vmatprep.subr.bf16.mxu1 %v690_v0  ;;  %v620_v13 = vld [vmem:[#allocation4] sm:$0xff]   ;;  %v621_v14 = vld [vmem:[#allocation4 + $0x8] sm:$0xff]   ;;  %v622_v15 = vld [vmem:[#allocation4 + $0x10] sm:$0xff]  }
  0x2b   :  { %v623_v16 = vld [vmem:[#allocation4 + $0x18] sm:$0xff]   ;;  %v624_v17 = vld [vmem:[#allocation4 + $0x20] sm:$0xff]   ;;  %v625_v18 = vld [vmem:[#allocation4 + $0x28] sm:$0xff]  }
  0x2c   :  { %540 = vmatmul.mubr.msk.bf16.vlgmr.msra.gmra.mrb[0].mxu0 %vm79_vm1, %v63_v4  ;;  %v478_v19 = vld [vmem:[%s870_s2] ss:$0 sm:$0xff]  ;;  %v627_v30 = vld [vmem:[#allocation4 + $0x38] sm:$0xff]   ;;  %v630_v33 = vld [vmem:[%s875_s7 + $0x10] sm:$0xff]  }
  0x2d   :  { %579 = vmatprep.mubr.msk.bf16.mxu0 %vm691_vm0, %v690_v0  ;;  %546 = vmatpush3.bf16.msra.mxu1 %v613_v6  ;;  %v626_v29 = vld [vmem:[#allocation4 + $0x30] sm:$0xff]   ;;  %v629_v32 = vld [vmem:[%s875_s7 + $0x8] sm:$0xff]   ;;  %v631_v34 = vld [vmem:[%s875_s7 + $0x18] sm:$0xff]  }
  0x2e   :  { %547 = vmatprep.subr.bf16.mxu1 %v690_v0  ;;  %564 = vmatpush3.bf16.msra.mxu0 %v620_v13  ;;  %v628_v31 = vld [vmem:[%s875_s7] sm:$0xff]   ;;  %v633_v36 = vld [vmem:[%s875_s7 + $0x28] sm:$0xff]   ;;  %v634_v47 = vld [vmem:[%s875_s7 + $0x30] sm:$0xff]  }
  0x2f   :  { %565 = vmatprep.subr.bf16.mxu0 %v690_v0  ;;  %v632_v35 = vld [vmem:[%s875_s7 + $0x20] sm:$0xff]   ;;  %v635_v48 = vld [vmem:[%s875_s7 + $0x38] sm:$0xff]  }
  0x30   :  { %v481_v37 = vld [vmem:[%s872_s4] ss:$0 sm:$0xff] }
  0x31   :  { %548 = vmatpush3.bf16.msra.mxu1 %v614_v7  ;;  %v490_v49 = vld [vmem:[%s874_s6] ss:$0 sm:$0xff] }
  0x32   :  { %549 = vmatprep.subr.bf16.mxu1 %v690_v0  ;;  %566 = vmatpush3.bf16.msra.mxu0 %v621_v14  ;;  %v499_v59 = vld [vmem:[%s876_s8] ss:$0 sm:$0xff] }
  0x33   :  { %567 = vmatprep.subr.bf16.mxu0 %v690_v0 }
  0x35   :  { %550 = vmatpush3.bf16.msra.mxu1 %v615_v8 }
  0x36   :  { %551 = vmatprep.subr.bf16.mxu1 %v690_v0  ;;  %568 = vmatpush3.bf16.msra.mxu0 %v622_v15 }
  0x37   :  { %569 = vmatprep.subr.bf16.mxu0 %v690_v0 }
  0x39   :  { %552 = vmatpush3.bf16.msra.mxu1 %v616_v9 }
  0x3a   :  { %553 = vmatprep.subr.bf16.mxu1 %v690_v0  ;;  %570 = vmatpush3.bf16.msra.mxu0 %v623_v16 }
  0x3b   :  { %571 = vmatprep.subr.bf16.mxu0 %v690_v0 }
  0x3d   :  { %554 = vmatpush3.bf16.msra.mxu1 %v617_v10 }
  0x3e   :  { %555 = vmatprep.subr.bf16.mxu1 %v690_v0  ;;  %572 = vmatpush3.bf16.msra.mxu0 %v624_v17 }
  0x3f   :  { %573 = vmatprep.subr.bf16.mxu0 %v690_v0 }
  0x41   :  { %556 = vmatpush3.bf16.msra.mxu1 %v618_v11 }
  0x42   :  { %557 = vmatprep.subr.bf16.mxu1 %v690_v0  ;;  %574 = vmatpush3.bf16.msra.mxu0 %v625_v18 }
  0x43   :  { %575 = vmatprep.subr.bf16.mxu0 %v690_v0 }
  0x45   :  { %558 = vmatpush3.bf16.msra.mxu1 %v619_v12 }
  0x46   :  { %583 = vmatprep.subr.bf16.mxu1 %v690_v0  ;;  %576 = vmatpush3.bf16.msra.mxu0 %v626_v29 }
  0x47   :  { %577 = vmatprep.subr.bf16.mxu0 %v690_v0 }
  0x4a   :  { %578 = vmatpush3.bf16.msra.mxu0 %v627_v30 }
  0xff   :  { %v117_v20 = vpop.f32.mrb[0].mxu0 }
 0x100   :  { %v118_v21 = vadd.f32 %v478_v19, %v117_v20  ;;  %v541_v22 = vpop.f32.mrb[1].mxu0 }
 0x101   :  { %v120_v23 = vpop.f32.mrb[2].mxu0 }
 0x102   :  { %v121_v24 = vadd.f32 %v478_v19, %v120_v23  ;;  %v542_v25 = vpop.f32.mrb[3].mxu0  ;;  %v124_v26 = vmax.f32 %v118_v21, 0.0 }
 0x104   :  { %v125_v27 = vmax.f32 %v121_v24, 0.0 }
 0x106   :  { %v126_v28 = vpack.c.bf16 %v125_v27, %v124_v26 }
 0x108   :  { %560 = vmatmul.mubr.bf16.vlgmr.msra.gmra.mrb[0].mxu1 %v126_v28 }
 0x109   :  { %599 = vmatprep.mubr.msk.bf16.mxu1 %vm691_vm0, %v690_v0  ;;  %584 = vmatpush3.bf16.msra.mxu1 %v628_v31 }
 0x10a   :  { %585 = vmatprep.subr.bf16.mxu1 %v690_v0 }
 0x10d   :  { %586 = vmatpush3.bf16.msra.mxu1 %v629_v32 }
 0x10e   :  { %587 = vmatprep.subr.bf16.mxu1 %v690_v0 }
 0x111   :  { %588 = vmatpush3.bf16.msra.mxu1 %v630_v33 }
 0x112   :  { %589 = vmatprep.subr.bf16.mxu1 %v690_v0 }
 0x115   :  { %590 = vmatpush3.bf16.msra.mxu1 %v631_v34 }
 0x116   :  { %591 = vmatprep.subr.bf16.mxu1 %v690_v0 }
 0x119   :  { %592 = vmatpush3.bf16.msra.mxu1 %v632_v35 }
 0x11a   :  { %593 = vmatprep.subr.bf16.mxu1 %v690_v0 }
 0x11d   :  { %594 = vmatpush3.bf16.msra.mxu1 %v633_v36 }
 0x11e   :  { %595 = vmatprep.subr.bf16.mxu1 %v690_v0 }
 0x121   :  { %596 = vmatpush3.bf16.msra.mxu1 %v634_v47 }
 0x122   :  { %597 = vmatprep.subr.bf16.mxu1 %v690_v0 }
 0x125   :  { %598 = vmatpush3.bf16.msra.mxu1 %v635_v48 }
 0x1db   :  { %v232_v38 = vpop.f32.mrb[0].mxu1 }
 0x1dc   :  { %v233_v39 = vadd.f32 %v481_v37, %v232_v38  ;;  %v561_v40 = vpop.f32.mrb[1].mxu1 }
 0x1dd   :  { %v235_v41 = vpop.f32.mrb[2].mxu1 }
 0x1de   :  { %v236_v42 = vadd.f32 %v481_v37, %v235_v41  ;;  %v562_v43 = vpop.f32.mrb[3].mxu1  ;;  %v239_v44 = vmax.f32 %v233_v39, 0.0 }
 0x1e0   :  { %v240_v45 = vmax.f32 %v236_v42, 0.0 }
 0x1e2   :  { %v241_v46 = vpack.c.bf16 %v240_v45, %v239_v44 }
 0x1e4   :  { %580 = vmatmul.mubr.bf16.vlgmr.msra.gmra.mrb[4].mxu0 %v241_v46 }
 0x2b7   :  { %v347_v50 = vpop.f32.mrb[4].mxu0 }
 0x2b8   :  { %v348_v51 = vadd.f32 %v490_v49, %v347_v50  ;;  %v581_v52 = vpop.f32.mrb[5].mxu0 }
 0x2b9   :  { %v350_v53 = vpop.f32.mrb[6].mxu0 }
 0x2ba   :  { %v351_v54 = vadd.f32 %v490_v49, %v350_v53  ;;  %v582_v55 = vpop.f32.mrb[7].mxu0  ;;  %v354_v56 = vmax.f32 %v348_v51, 0.0 }
 0x2bc   :  { %v355_v57 = vmax.f32 %v351_v54, 0.0 }
 0x2be   :  { %v356_v58 = vpack.c.bf16 %v355_v57, %v354_v56 }
 0x2c0   :  { %600 = vmatmul.mubr.bf16.vlgmr.msra.gmra.mrb[4].mxu1 %v356_v58 }
 0x393   :  { %v462_v60 = vpop.f32.mrb[4].mxu1 }
 0x394   :  { %v463_v61 = vadd.f32 %v499_v59, %v462_v60  ;;  %v601_v62 = vpop.f32.mrb[5].mxu1 }
 0x395   :  { %v465_v63 = vpop.f32.mrb[6].mxu1 }
 0x396   :  { %470 = vst.msk [vmem:[%s877_s9] sm:$0xff] %vm469_vm2, %v463_v61  ;;  %v466_v0 = vadd.f32 %v499_v59, %v465_v63  ;;  %v602_v1 = vpop.f32.mrb[7].mxu1 }
 0x398   :  { %471 = vst.msk [vmem:[%s877_s9 + $0x8] sm:$0xff] %vm469_vm2, %v466_v0 }
 0x399   :  { %476 = vsyncpa [#allocation3], 1 }
 0x39a   :  { %477 = vsyncpa [#allocation5], 1 }

</bundles_post_ra>
